<compile_context>
chip_gen: v5e
topology: v5e:2x2
jax: 0.10.0
libtpu: 0.0.40
codegen_flags: <defaults>
</compile_context>

<pallas_src>
import jax
import jax.numpy as jnp
from jax.experimental import pallas as pl
from jax.experimental.pallas import tpu as pltpu

_EPS = 1e-5
_LANE = 128


def _round_up(x, m):
    return (x + m - 1) // m * m


def _pick_tile(total, cap):
    """Largest multiple of 128 that divides `total` and is <= cap."""
    t = max(_LANE, min(cap, total))
    t -= t % _LANE
    while total % t:
        t -= _LANE
    return t


def _pad2(a, rows, cols):
    return jnp.pad(a, ((0, rows - a.shape[0]), (0, cols - a.shape[1])))


def _proj_mlp_kernel(x_ref, w1_ref, g1_ref, b1_ref, w2_ref, o_ref, acc_ref):
    k = pl.program_id(1)

    @pl.when(k == 0)
    def _init():
        acc_ref[...] = jnp.zeros_like(acc_ref)

    # ---- Linear 1 slab: [B, Hp] bf16 @ [Hp, tk] bf16 -> [B, tk] f32 (MXU) ----
    xb = x_ref[...].astype(jnp.bfloat16)
    h = jnp.dot(xb, w1_ref[...], preferred_element_type=jnp.float32)

    # ---- BatchNorm1d(2H) on this feature slab (full batch resident: exact) ----
    mu1 = jnp.mean(h, axis=0, keepdims=True)
    d1 = h - mu1
    var1 = jnp.mean(d1 * d1, axis=0, keepdims=True)      # biased variance
    h = d1 * jax.lax.rsqrt(var1 + _EPS)
    h = h * g1_ref[...] + b1_ref[...]

    # ---- ReLU (VPU), cast to bf16 for the second MXU pass ----
    h = jnp.maximum(h, 0.0).astype(jnp.bfloat16)

    # ---- Linear 2 slab: accumulate [B, tk] @ [tk, tn] into f32 scratch ----
    acc_ref[...] += jnp.dot(h, w2_ref[...], preferred_element_type=jnp.float32)

    # ---- BatchNorm1d(H, affine=False) + store, once all k slabs are summed ----
    @pl.when(k == pl.num_programs(1) - 1)
    def _finalize():
        y = acc_ref[...]
        mu2 = jnp.mean(y, axis=0, keepdims=True)
        d2 = y - mu2
        var2 = jnp.mean(d2 * d2, axis=0, keepdims=True)
        o_ref[...] = (d2 * jax.lax.rsqrt(var2 + _EPS)).astype(o_ref.dtype)


def projection_mlp(x, w1_t, gamma1, beta1, w2_t, *, tile_n=512, tile_k=512):
    """DiffCSE ProjectionMLP forward (training-mode BatchNorm, batch stats).

    x:      [B, H]   activations
    w1_t:   [H, 2H]  first Linear weight, pre-transposed (in, out)
    gamma1: [1, 2H]  BatchNorm1d(2H) scale
    beta1:  [1, 2H]  BatchNorm1d(2H) shift
    w2_t:   [2H, H]  second Linear weight, pre-transposed (in, out)
    returns [B, H]
    """
    B, h_in = x.shape
    k_dim, h_out = w2_t.shape
    assert w1_t.shape == (h_in, k_dim)
    assert gamma1.shape == (1, k_dim) and beta1.shape == (1, k_dim)

    # Lane-dense padding: every feature axis -> multiple of 128.
    hp_in = _round_up(h_in, _LANE)
    kp = _round_up(k_dim, _LANE)
    hp_out = _round_up(h_out, _LANE)

    tn = _pick_tile(hp_out, tile_n)
    tk = _pick_tile(kp, tile_k)
    grid = (hp_out // tn, kp // tk)   # (n: parallel, k: arbitrary/reduction last)

    # Zero padding keeps the math exact: padded x cols / W1 rows / W2 rows+cols
    # are zero and padded beta is zero, so padded lanes stay 0 and never touch
    # real outputs; they are sliced off below.
    x_p = _pad2(x.astype(jnp.float32), B, hp_in)
    w1_p = _pad2(w1_t, hp_in, kp).astype(jnp.bfloat16)
    g_p = _pad2(gamma1.astype(jnp.float32), 1, kp)
    b_p = _pad2(beta1.astype(jnp.float32), 1, kp)
    w2_p = _pad2(w2_t, kp, hp_out).astype(jnp.bfloat16)

    # Weight-slab pipelining: 3-deep only when there are enough k steps for a
    # deeper buffer to hide DMA behind the short per-step MXU work.
    w_pipe = dict(pipeline_mode=pl.Buffered(3)) if grid[1] > 2 else {}
    w1_spec = pl.BlockSpec((hp_in, tk), lambda n, k: (0, k), **w_pipe)
    w2_spec = pl.BlockSpec((tk, tn), lambda n, k: (k, n), **w_pipe)

    n_wbuf = 3 if grid[1] > 2 else 2
    vmem_need = (
        2 * B * hp_in * 4            # x block (double-buffered, f32)
        + n_wbuf * hp_in * tk * 2    # w1 slabs (bf16)
        + n_wbuf * tk * tn * 2       # w2 slabs (bf16)
        + 2 * 2 * tk * 4             # gamma / beta slabs
        + 2 * B * tn * 4             # output block
        + B * tn * 4                 # f32 accumulator scratch
    )
    vmem_limit = min(max(int(vmem_need * 1.5) + (2 << 20), 32 << 20), 64 << 20)

    out_p = pl.pallas_call(
        _proj_mlp_kernel,
        out_shape=jax.ShapeDtypeStruct((B, hp_out), x.dtype),
        grid_spec=pltpu.PrefetchScalarGridSpec(
            num_scalar_prefetch=0,
            grid=grid,
            in_specs=[
                pl.BlockSpec((B, hp_in), lambda n, k: (0, 0)),   # full batch, never tiled
                w1_spec,
                pl.BlockSpec((1, tk), lambda n, k: (0, k)),      # gamma slab
                pl.BlockSpec((1, tk), lambda n, k: (0, k)),      # beta slab
                w2_spec,
            ],
            out_specs=pl.BlockSpec((B, tn), lambda n, k: (0, n)),
            scratch_shapes=[pltpu.VMEM((B, tn), jnp.float32)],
        ),
        compiler_params=pltpu.CompilerParams(
            dimension_semantics=("parallel", "arbitrary"),
            vmem_limit_bytes=vmem_limit,
        ),
        cost_estimate=pl.CostEstimate(
            flops=2 * B * kp * (hp_in + hp_out),
            transcendentals=kp + hp_out,
            bytes_accessed=(x_p.size * 4 + w1_p.size * 2 + w2_p.size * 2
                            + g_p.size * 4 + b_p.size * 4 + B * hp_out * 4),
        ),
    )(x_p, w1_p, g_p, b_p, w2_p)

    return out_p[:, :h_out]


def _reference_f32(x, w1_t, gamma1, beta1, w2_t):
    h = x @ w1_t
    mu = h.mean(0, keepdims=True)
    var = ((h - mu) ** 2).mean(0, keepdims=True)
    h = (h - mu) / jnp.sqrt(var + _EPS) * gamma1 + beta1
    h = jnp.maximum(h, 0.0)
    y = h @ w2_t
    mu2 = y.mean(0, keepdims=True)
    var2 = ((y - mu2) ** 2).mean(0, keepdims=True)
    return (y - mu2) / jnp.sqrt(var2 + _EPS)


def _reference_bf16_matched(x, w1_t, gamma1, beta1, w2_t):
    # Same math with the kernel's mixed precision: bf16 matmul operands,
    # f32 accumulation, f32 BatchNorm arithmetic.
    h = jnp.dot(x.astype(jnp.bfloat16), w1_t.astype(jnp.bfloat16),
                preferred_element_type=jnp.float32)
    mu = h.mean(0, keepdims=True)
    var = ((h - mu) ** 2).mean(0, keepdims=True)
    h = (h - mu) * jax.lax.rsqrt(var + _EPS) * gamma1 + beta1
    h = jnp.maximum(h, 0.0).astype(jnp.bfloat16)
    y = jnp.dot(h, w2_t.astype(jnp.bfloat16), preferred_element_type=jnp.float32)
    mu2 = y.mean(0, keepdims=True)
    var2 = ((y - mu2) ** 2).mean(0, keepdims=True)
    return (y - mu2) * jax.lax.rsqrt(var2 + _EPS)


if __name__ == "__main__":
    # Small config: hidden_size = 32, batch = 8 (training-mode BN needs batch > 1).
    B, H = 8, 32
    key = jax.random.PRNGKey(0)
    kx, kw1, kw2 = jax.random.split(key, 3)

    x = jax.random.normal(kx, (B, H), dtype=jnp.float32)

    # nn.Linear weights are [out, in]; pre-transposed to [in, out] for x @ W.
    w1_t = (jax.random.uniform(kw1, (H, 2 * H), jnp.float32, -1.0, 1.0)
            * (1.0 / jnp.sqrt(H)))
    w2_t = (jax.random.uniform(kw2, (2 * H, H), jnp.float32, -1.0, 1.0)
            * (1.0 / jnp.sqrt(2 * H)))
    # BatchNorm1d(2H) default affine init: gamma=1, beta=0.
    gamma1 = jnp.ones((1, 2 * H), jnp.float32)
    beta1 = jnp.zeros((1, 2 * H), jnp.float32)

    out = projection_mlp(x, w1_t, gamma1, beta1, w2_t)
    out = jax.block_until_ready(out)
    assert out.shape == (B, H)
    assert not jnp.any(jnp.isnan(out))

    # Precision-matched reference (same bf16 operands / f32 accumulation).
    ref_m = _reference_bf16_matched(x, w1_t, gamma1, beta1, w2_t)
    assert jnp.allclose(out, ref_m, atol=5e-3, rtol=5e-3), \
        float(jnp.max(jnp.abs(out - ref_m)))

    # Loose sanity check against the full-f32 reference (bf16 weight storage
    # introduces ~1e-2-level deviation after BatchNorm at this tiny batch).
    ref = _reference_f32(x, w1_t, gamma1, beta1, w2_t)
    assert jnp.allclose(out, ref, atol=1e-1, rtol=1e-1), \
        float(jnp.max(jnp.abs(out - ref)))

    print("KERNEL_OK")
</pallas_src>

<mosaic_0001>
module attributes {stable_mosaic.version = 11 : i64} {
  func.func @_proj_mlp_kernel(%arg0: i32, %arg1: i32, %arg2: memref<8x128xf32, #tpu.memory_space<vmem>>, %arg3: memref<128x128xbf16, #tpu.memory_space<vmem>>, %arg4: memref<1x128xf32, #tpu.memory_space<vmem>>, %arg5: memref<1x128xf32, #tpu.memory_space<vmem>>, %arg6: memref<128x128xbf16, #tpu.memory_space<vmem>>, %arg7: memref<8x128xf32, #tpu.memory_space<vmem>>, %arg8: memref<8x128xf32, #tpu.memory_space<vmem>>) attributes {dimension_semantics = [#tpu.dimension_semantics<parallel>, #tpu.dimension_semantics<arbitrary>], iteration_bounds = array<i64: 1, 1>, scalar_prefetch = 0 : i64, scratch_operands = 1 : i64, tpu.core_type = #tpu.core_type<tc>, window_params = [{pipeline_mode = #tpu.pipeline_mode<synchronous>, transform_indices = @transform_0, window_bounds = array<i64: 8, 128>}, {transform_indices = @transform_1, window_bounds = array<i64: 128, 128>}, {transform_indices = @transform_2, window_bounds = array<i64: 1, 128>}, {transform_indices = @transform_3, window_bounds = array<i64: 1, 128>}, {transform_indices = @transform_4, window_bounds = array<i64: 128, 128>}, {transform_indices = @transform_5, window_bounds = array<i64: 8, 128>}]} {
    %c0_i32 = arith.constant 0 : i32
    %0 = arith.cmpi eq, %arg1, %c0_i32 : i32
    %1 = arith.extui %0 : i1 to i32
    %c0_i32_0 = arith.constant 0 : i32
    %2 = arith.cmpi ne, %1, %c0_i32_0 : i32
    scf.if %2 {
      %cst_23 = arith.constant 0.000000e+00 : f32
      %40 = vector.broadcast %cst_23 : f32 to vector<8x128xf32>
      %c0_24 = arith.constant 0 : index
      %c0_25 = arith.constant 0 : index
      %41 = vector.load %arg8[%c0_24, %c0_25] : memref<8x128xf32, #tpu.memory_space<vmem>>, vector<8x128xf32>
      tpu.vector_store %arg8[%c0_24, %c0_25], %40 {strides = array<i32>} : memref<8x128xf32, #tpu.memory_space<vmem>>, vector<8x128xf32>,
    } else {
    }
    %c0 = arith.constant 0 : index
    %c0_1 = arith.constant 0 : index
    %3 = vector.load %arg2[%c0, %c0_1] : memref<8x128xf32, #tpu.memory_space<vmem>>, vector<8x128xf32>
    %4 = arith.truncf %3 : vector<8x128xf32> to vector<8x128xbf16>
    %c0_2 = arith.constant 0 : index
    %c0_3 = arith.constant 0 : index
    %5 = vector.load %arg3[%c0_2, %c0_3] : memref<128x128xbf16, #tpu.memory_space<vmem>>, vector<128x128xbf16>
    %cst = arith.constant dense<0.000000e+00> : vector<8x128xf32>
    %6 = tpu.matmul %4, %5, %cst {dimension_numbers = #tpu.dot_dimension_numbers<[1], [0], [0], [1], [0, 0, 1, 1], [], []>} : vector<8x128xbf16>, vector<128x128xbf16>, vector<8x128xf32> -> vector<8x128xf32>
    %cst_4 = arith.constant dense<0.000000e+00> : vector<128xf32>
    %7 = vector.multi_reduction <add>, %6, %cst_4 [0] : vector<8x128xf32> to vector<128xf32>
    %8 = vector.shape_cast %7 : vector<128xf32> to vector<1x128xf32>
    %cst_5 = arith.constant 8.000000e+00 : f32
    %9 = vector.broadcast %cst_5 : f32 to vector<1x128xf32>
    %10 = arith.divf %8, %9 : vector<1x128xf32>
    %11 = vector.broadcast %10 : vector<1x128xf32> to vector<8x128xf32>
    %12 = arith.subf %6, %11 : vector<8x128xf32>
    %13 = arith.mulf %12, %12 : vector<8x128xf32>
    %cst_6 = arith.constant dense<0.000000e+00> : vector<128xf32>
    %14 = vector.multi_reduction <add>, %13, %cst_6 [0] : vector<8x128xf32> to vector<128xf32>
    %15 = vector.shape_cast %14 : vector<128xf32> to vector<1x128xf32>
    %cst_7 = arith.constant 8.000000e+00 : f32
    %16 = vector.broadcast %cst_7 : f32 to vector<1x128xf32>
    %17 = arith.divf %15, %16 : vector<1x128xf32>
    %cst_8 = arith.constant 9.99999974E-6 : f32
    %18 = vector.broadcast %cst_8 : f32 to vector<1x128xf32>
    %19 = arith.addf %17, %18 : vector<1x128xf32>
    %20 = math.rsqrt %19 : vector<1x128xf32>
    %21 = vector.broadcast %20 : vector<1x128xf32> to vector<8x128xf32>
    %22 = arith.mulf %12, %21 : vector<8x128xf32>
    %c0_9 = arith.constant 0 : index
    %c0_10 = arith.constant 0 : index
    %23 = vector.load %arg4[%c0_9, %c0_10] : memref<1x128xf32, #tpu.memory_space<vmem>>, vector<1x128xf32>
    %24 = vector.broadcast %23 : vector<1x128xf32> to vector<8x128xf32>
    %25 = arith.mulf %22, %24 : vector<8x128xf32>
    %c0_11 = arith.constant 0 : index
    %c0_12 = arith.constant 0 : index
    %26 = vector.load %arg5[%c0_11, %c0_12] : memref<1x128xf32, #tpu.memory_space<vmem>>, vector<1x128xf32>
    %27 = vector.broadcast %26 : vector<1x128xf32> to vector<8x128xf32>
    %28 = arith.addf %25, %27 : vector<8x128xf32>
    %cst_13 = arith.constant 0.000000e+00 : f32
    %29 = vector.broadcast %cst_13 : f32 to vector<8x128xf32>
    %30 = arith.maximumf %28, %29 : vector<8x128xf32>
    %31 = arith.truncf %30 : vector<8x128xf32> to vector<8x128xbf16>
    %c0_14 = arith.constant 0 : index
    %c0_15 = arith.constant 0 : index
    %32 = vector.load %arg8[%c0_14, %c0_15] : memref<8x128xf32, #tpu.memory_space<vmem>>, vector<8x128xf32>
    %c0_16 = arith.constant 0 : index
    %c0_17 = arith.constant 0 : index
    %33 = vector.load %arg6[%c0_16, %c0_17] : memref<128x128xbf16, #tpu.memory_space<vmem>>, vector<128x128xbf16>
    %cst_18 = arith.constant dense<0.000000e+00> : vector<8x128xf32>
    %34 = tpu.matmul %31, %33, %cst_18 {dimension_numbers = #tpu.dot_dimension_numbers<[1], [0], [0], [1], [0, 0, 1, 1], [], []>} : vector<8x128xbf16>, vector<128x128xbf16>, vector<8x128xf32> -> vector<8x128xf32>
    %35 = arith.addf %32, %34 : vector<8x128xf32>
    %c0_19 = arith.constant 0 : index
    %c0_20 = arith.constant 0 : index
    %36 = vector.load %arg8[%c0_19, %c0_20] : memref<8x128xf32, #tpu.memory_space<vmem>>, vector<8x128xf32>
    tpu.vector_store %arg8[%c0_19, %c0_20], %35 {strides = array<i32>} : memref<8x128xf32, #tpu.memory_space<vmem>>, vector<8x128xf32>,
    %c0_i32_21 = arith.constant 0 : i32
    %37 = arith.cmpi eq, %arg1, %c0_i32_21 : i32
    %38 = arith.extui %37 : i1 to i32
    %c0_i32_22 = arith.constant 0 : i32
    %39 = arith.cmpi ne, %38, %c0_i32_22 : i32
    scf.if %39 {
      %c0_23 = arith.constant 0 : index
      %c0_24 = arith.constant 0 : index
      %40 = vector.load %arg8[%c0_23, %c0_24] : memref<8x128xf32, #tpu.memory_space<vmem>>, vector<8x128xf32>
      %cst_25 = arith.constant dense<0.000000e+00> : vector<128xf32>
      %41 = vector.multi_reduction <add>, %40, %cst_25 [0] : vector<8x128xf32> to vector<128xf32>
      %42 = vector.shape_cast %41 : vector<128xf32> to vector<1x128xf32>
      %cst_26 = arith.constant 8.000000e+00 : f32
      %43 = vector.broadcast %cst_26 : f32 to vector<1x128xf32>
      %44 = arith.divf %42, %43 : vector<1x128xf32>
      %45 = vector.broadcast %44 : vector<1x128xf32> to vector<8x128xf32>
      %46 = arith.subf %40, %45 : vector<8x128xf32>
      %47 = arith.mulf %46, %46 : vector<8x128xf32>
      %cst_27 = arith.constant dense<0.000000e+00> : vector<128xf32>
      %48 = vector.multi_reduction <add>, %47, %cst_27 [0] : vector<8x128xf32> to vector<128xf32>
      %49 = vector.shape_cast %48 : vector<128xf32> to vector<1x128xf32>
      %cst_28 = arith.constant 8.000000e+00 : f32
      %50 = vector.broadcast %cst_28 : f32 to vector<1x128xf32>
      %51 = arith.divf %49, %50 : vector<1x128xf32>
      %cst_29 = arith.constant 9.99999974E-6 : f32
      %52 = vector.broadcast %cst_29 : f32 to vector<1x128xf32>
      %53 = arith.addf %51, %52 : vector<1x128xf32>
      %54 = math.rsqrt %53 : vector<1x128xf32>
      %55 = vector.broadcast %54 : vector<1x128xf32> to vector<8x128xf32>
      %56 = arith.mulf %46, %55 : vector<8x128xf32>
      %c0_30 = arith.constant 0 : index
      %c0_31 = arith.constant 0 : index
      %57 = vector.load %arg7[%c0_30, %c0_31] : memref<8x128xf32, #tpu.memory_space<vmem>>, vector<8x128xf32>
      tpu.vector_store %arg7[%c0_30, %c0_31], %56 {strides = array<i32>} : memref<8x128xf32, #tpu.memory_space<vmem>>, vector<8x128xf32>,
    } else {
    }
    return
  }
  func.func @transform_0(%arg0: i32, %arg1: i32) -> (i32, i32) {
    %c0_i32 = arith.constant 0 : i32
    %c0_i32_0 = arith.constant 0 : i32
    %c0_i32_1 = arith.constant 0 : i32
    return %c0_i32, %c0_i32_0 : i32, i32
  }
  func.func @transform_1(%arg0: i32, %arg1: i32) -> (i32, i32) {
    %c0_i32 = arith.constant 0 : i32
    %c0_i32_0 = arith.constant 0 : i32
    return %c0_i32, %arg1 : i32, i32
  }
  func.func @transform_2(%arg0: i32, %arg1: i32) -> (i32, i32) {
    %c0_i32 = arith.constant 0 : i32
    %c0_i32_0 = arith.constant 0 : i32
    return %c0_i32, %arg1 : i32, i32
  }
  func.func @transform_3(%arg0: i32, %arg1: i32) -> (i32, i32) {
    %c0_i32 = arith.constant 0 : i32
    %c0_i32_0 = arith.constant 0 : i32
    return %c0_i32, %arg1 : i32, i32
  }
  func.func @transform_4(%arg0: i32, %arg1: i32) -> (i32, i32) {
    %c0_i32 = arith.constant 0 : i32
    return %arg1, %arg0 : i32, i32
  }
  func.func @transform_5(%arg0: i32, %arg1: i32) -> (i32, i32) {
    %c0_i32 = arith.constant 0 : i32
    %c0_i32_0 = arith.constant 0 : i32
    return %c0_i32, %arg0 : i32, i32
  }
}

</mosaic_0001>

<bundles_post_ra>
// kernel: tpu_custom_call.1
= control target key start
LH: loop header
LB: loop body
LE: loop exit
PB: predicated region body
PF: predicated region fallthrough
CT: control target
= control target key end

     0   :  { %10 = vsyncpa [#allocation4], 0  ;;  %s580_s0 = inlined_call_operand.hbm [shape: f32[8,128], index: 0, kind: input, shape index: {}]   ;;  %s581_s1 = inlined_call_operand.hbm [shape: bf16[128,128], index: 1, kind: input, shape index: {}]   ;;  %s582_s2 = inlined_call_operand.vmem [shape: f32[1,128], index: 2, kind: input, shape index: {}]   ;;  %s583_s3 = inlined_call_operand.vmem [shape: f32[1,128], index: 3, kind: input, shape index: {}]   ;;  %s584_s4 = inlined_call_operand.hbm [shape: bf16[128,128], index: 4, kind: input, shape index: {}]   ;;  %s585_s5 = inlined_call_operand.hbm [shape: f32[8,128], index: 5, kind: output, shape index: {}]  }
   0x1   :  { %11 = vsyncpa [#allocation7], 0  ;;  %s28_s20 = sshll.u32 %s581_s1, 4  ;;  %s29_s20 = int_to_ptr.hbm [resolvable:$true] %s28_s20 }
   0x2   :  { %12 = vsyncpa [#allocation5], 0  ;;  %s525_s21 = smov [#allocation6]   ;;  %s18_s25 = sshll.u32 %s580_s0, 4  ;;  %s19_s25 = int_to_ptr.hbm [resolvable:$true] %s18_s25 }
   0x3   :  { %s30_s22 = sshll.u32 %s525_s21, 4  ;;  %s526_s26 = smov 64   ;;  %s31_s22 = int_to_ptr.vmem [resolvable:$true] %s30_s22 }
   0x4   :  { %s527_s27 = smov 4   ;;  %s528_s28 = smov [#allocation3]  }
   0x5   :  { %36 = dma.hbm_to_vmem [thread:$0]  %s29_s20, 1024, %s31_s22, [#allocation7], %s526_s26, %s526_s26, %s527_s27  }
   0x6   :  { %s20_s29 = sshll.u32 %s528_s28, 4  ;;  %s45_s7 = sshll.u32 %s584_s4, 4  ;;  %s21_s29 = int_to_ptr.vmem [resolvable:$true] %s20_s29  ;;  %s46_s7 = int_to_ptr.hbm [resolvable:$true] %s45_s7 }
   0x7   :  { %23 = dma.hbm_to_vmem [thread:$0]  %s19_s25, 128, %s21_s29, [#allocation4]  }
   0x8   :  { %s529_s1 = smov [#allocation8]  }
   0x9   :  { %s47_s8 = sshll.u32 %s529_s1, 4  ;;  %s48_s8 = int_to_ptr.vmem [resolvable:$true] %s47_s8 }
   0xa   :  { %53 = dma.hbm_to_vmem [thread:$0]  %s46_s7, 1024, %s48_s8, [#allocation7], %s526_s26, %s526_s26, %s527_s27  }
   0xb   :  { %519 = dma.done.wait [#allocation4], 128  }
   0xc   :  { %520 = vsyncadd [#allocation4], 4294967168 }
   0xd   :  { %521 = dma.done.wait [#allocation7], 2048  }
   0xe   :  { %522 = vsyncadd [#allocation7], 4294965248  ;;  %v399_v0 = vld [vmem:[#allocation6 + $0x38] sm:$0xff]  ;;  %v398_v1 = vld [vmem:[#allocation6 + $0x30] sm:$0xff]  ;;  %v530_v10 = vmov 8.0   ;;  %s317_s13 = sshll.u32 %s585_s5, 4  ;;  %s318_s13 = int_to_ptr.hbm [resolvable:$true] %s317_s13 }
   0xf   :  { %137 = vmatpush.bf16.msra.mxu0 %v399_v0  ;;  %v397_v2 = vld [vmem:[#allocation6 + $0x28] sm:$0xff]  ;;  %v396_v3 = vld [vmem:[#allocation6 + $0x20] sm:$0xff]  ;;  %v395_v4 = vld [vmem:[#allocation6 + $0x18] sm:$0xff]  ;;  %417 = vrcp.f32 %v530_v10 }
  0x10   :  { %v394_v5 = vld [vmem:[#allocation6 + $0x10] sm:$0xff]  ;;  %v393_v6 = vld [vmem:[#allocation6 + $0x8] sm:$0xff]  ;;  %v392_v7 = vld [vmem:[#allocation6] sm:$0xff] }
  0x11   :  { %v71_v8 = vld [vmem:[#allocation3] sm:$0xff]  ;;  %v406_v18 = vld [vmem:[#allocation8 + $0x30] sm:$0xff]  ;;  %v405_v22 = vld [vmem:[#allocation8 + $0x28] sm:$0xff] }
  0x12   :  { %v72_v9 = vpack.c.bf16 %v71_v8, %v71_v8  ;;  %v407_v14 = vld [vmem:[#allocation8 + $0x38] sm:$0xff]  ;;  %v404_v27 = vld [vmem:[#allocation8 + $0x20] sm:$0xff]  ;;  %v402_v33 = vld [vmem:[#allocation8 + $0x10] sm:$0xff] }
  0x13   :  { %138 = vmatpush.bf16.msra.mxu0 %v398_v1  ;;  %262 = vmatpush.bf16.msra.mxu1 %v407_v14  ;;  %v403_v30 = vld [vmem:[#allocation8 + $0x18] sm:$0xff]  ;;  %v401_v36 = vld [vmem:[#allocation8 + $0x8] sm:$0xff]  ;;  %v400_v38 = vld [vmem:[#allocation8] sm:$0xff] }
  0x14   :  { %v415_v50 = vld [vmem:[%s582_s2] ss:$0 sm:$0xff]  ;;  %s531_s2 = smov [#allocation9]  }
  0x15   :  { %v418_v11 = vpop.eup %417  ;;  %v416_v53 = vld [vmem:[%s583_s3] ss:$0 sm:$0xff]  ;;  %s315_s3 = sshll.u32 %s531_s2, 4  ;;  %s316_s3 = int_to_ptr.vmem [resolvable:$true] %s315_s3 }
  0x16   :  { %v157_v12 = vmul.f32 8.0, %v418_v11  ;;  %vm161_vm0 = vweird.f32 %v418_v11 }
  0x17   :  { %139 = vmatpush.bf16.msra.mxu0 %v397_v2  ;;  %263 = vmatpush.bf16.msra.mxu1 %v406_v18 }
  0x18   :  { %v158_v13 = vsub.f32 1.0, %v157_v12 }
  0x1a   :  { %v159_v17 = vmul.f32 %v418_v11, %v158_v13 }
  0x1b   :  { %140 = vmatpush.bf16.msra.mxu0 %v396_v3  ;;  %264 = vmatpush.bf16.msra.mxu1 %v405_v22 }
  0x1c   :  { %v160_v21 = vadd.f32 %v418_v11, %v159_v17 }
  0x1e   :  { %v162_v26 = vsel %vm161_vm0, %v418_v11, %v160_v21 }
  0x1f   :  { %141 = vmatpush.bf16.msra.mxu0 %v395_v4  ;;  %265 = vmatpush.bf16.msra.mxu1 %v404_v27 }
  0x23   :  { %142 = vmatpush.bf16.msra.mxu0 %v394_v5  ;;  %266 = vmatpush.bf16.msra.mxu1 %v403_v30 }
  0x27   :  { %143 = vmatpush.bf16.msra.mxu0 %v393_v6  ;;  %267 = vmatpush.bf16.msra.mxu1 %v402_v33 }
  0x2b   :  { %144 = vmatpush.bf16.msra.mxu0 %v392_v7  ;;  %268 = vmatpush.bf16.msra.mxu1 %v401_v36 }
  0x2e   :  { %145 = vmatmul.bf16.vlgmr.msra.gmra.mxu0 %v72_v9 }
  0x2f   :  { %269 = vmatpush.bf16.msra.mxu1 %v400_v38 }
  0xab   :  { %v146_v15 = vpop.f32.mrf.mxu0 }
  0xac   :  { %v150_v16 = vrot.slane %v146_v15, 4 }
  0xae   :  { %v151_v19 = vadd.f32 %v150_v16, %v146_v15 }
  0xb0   :  { %v152_v20 = vrot.slane %v151_v19, 2 }
  0xb2   :  { %v153_v23 = vadd.f32 %v152_v20, %v151_v19 }
  0xb3   :  { %v148_v24 = vpop.f32.mrf.mxu0 }
  0xb4   :  { %v154_v25 = vrot.slane %v153_v23, 1 }
  0xb6   :  { %v155_v28 = vadd.f32 %v154_v25, %v153_v23 }
  0xb8   :  { %v163_v29 = vmul.f32 %v162_v26, %v155_v28 }
  0xba   :  { %v164_v31 = vsub.f32 %v146_v15, %v163_v29 }
  0xbc   :  { %v165_v32 = vmul.f32 %v164_v31, %v164_v31 }
  0xbe   :  { %v166_v34 = vrot.slane %v165_v32, 4 }
  0xc0   :  { %v167_v35 = vadd.f32 %v166_v34, %v165_v32 }
  0xc2   :  { %v168_v37 = vrot.slane %v167_v35, 2 }
  0xc4   :  { %v169_v39 = vadd.f32 %v168_v37, %v167_v35 }
  0xc6   :  { %v170_v40 = vrot.slane %v169_v39, 1 }
  0xc8   :  { %v171_v41 = vadd.f32 %v170_v40, %v169_v39 }
  0xca   :  { %v172_v42 = vmul.f32 %v171_v41, %v162_v26 }
  0xcc   :  { %v173_v43 = vadd.f32 1e-05, %v172_v42 }
  0xce   :  { %419 = vrsqrt.f32 %v173_v43  ;;  %vm180_vm2 = vweird.f32 %v173_v43 }
  0xd4   :  { %v420_v44 = vpop.eup %419 }
  0xd5   :  { %v175_v45 = vmul.f32 %v420_v44, %v173_v43  ;;  %vm181_vm1 = vweird.f32 %v420_v44 }
  0xd6   :  { %vm182_vm3 = vmor %vm180_vm2, %vm181_vm1 }
  0xd7   :  { %v176_v46 = vmul.f32 %v420_v44, %v175_v45 }
  0xd9   :  { %v177_v47 = vmul.f32 0.5, %v176_v46 }
  0xdb   :  { %v178_v48 = vsub.f32 1.5, %v177_v47 }
  0xdd   :  { %v179_v49 = vmul.f32 %v420_v44, %v178_v48 }
  0xdf   :  { %v183_v51 = vsel %vm182_vm3, %v420_v44, %v179_v49 }
  0xe0   :  { %v184_v52 = vmul.f32 %v183_v51, %v164_v31 }
  0xe2   :  { %v189_v54 = vmul.f32 %v415_v50, %v184_v52 }
  0xe4   :  { %v194_v55 = vadd.f32 %v416_v53, %v189_v54 }
  0xe6   :  { %v195_v56 = vmax.f32 %v194_v55, 0.0 }
  0xe8   :  { %v196_v57 = vpack.c.bf16 %v195_v56, %v195_v56 }
  0xea   :  { %270 = vmatmul.bf16.vlgmr.msra.gmra.mxu1 %v196_v57 }
 0x167   :  { %v271_v58 = vpop.f32.mrf.mxu1 }
 0x168   :  { %v281_v59 = vrot.slane %v271_v58, 4 }
 0x16a   :  { %v282_v60 = vadd.f32 %v281_v59, %v271_v58 }
 0x16c   :  { %v283_v61 = vrot.slane %v282_v60, 2 }
 0x16e   :  { %v284_v62 = vadd.f32 %v283_v61, %v282_v60 }
 0x16f   :  { %v273_v63 = vpop.f32.mrf.mxu1 }
 0x170   :  { %v285_v0 = vrot.slane %v284_v62, 1 }
 0x172   :  { %v286_v1 = vadd.f32 %v285_v0, %v284_v62 }
 0x174   :  { %v287_v2 = vmul.f32 %v286_v1, %v162_v26 }
 0x176   :  { %v288_v3 = vsub.f32 %v271_v58, %v287_v2 }
 0x178   :  { %v289_v4 = vmul.f32 %v288_v3, %v288_v3 }
 0x17a   :  { %v290_v5 = vrot.slane %v289_v4, 4 }
 0x17c   :  { %v291_v6 = vadd.f32 %v290_v5, %v289_v4 }
 0x17e   :  { %v292_v7 = vrot.slane %v291_v6, 2 }
 0x180   :  { %v293_v8 = vadd.f32 %v292_v7, %v291_v6 }
 0x182   :  { %v294_v9 = vrot.slane %v293_v8, 1 }
 0x184   :  { %v295_v10 = vadd.f32 %v294_v9, %v293_v8 }
 0x186   :  { %v296_v11 = vmul.f32 %v295_v10, %v162_v26 }
 0x188   :  { %v297_v12 = vadd.f32 1e-05, %v296_v11 }
 0x18a   :  { %421 = vrsqrt.f32 %v297_v12  ;;  %vm304_vm5 = vweird.f32 %v297_v12 }
 0x190   :  { %v422_v13 = vpop.eup %421 }
 0x191   :  { %v299_v14 = vmul.f32 %v422_v13, %v297_v12  ;;  %vm305_vm4 = vweird.f32 %v422_v13 }
 0x192   :  { %vm306_vm6 = vmor %vm304_vm5, %vm305_vm4 }
 0x193   :  { %v300_v15 = vmul.f32 %v422_v13, %v299_v14 }
 0x195   :  { %v301_v16 = vmul.f32 0.5, %v300_v15 }
 0x197   :  { %v302_v17 = vsub.f32 1.5, %v301_v16 }
 0x199   :  { %v303_v18 = vmul.f32 %v422_v13, %v302_v17 }
 0x19b   :  { %v307_v19 = vsel %vm306_vm6, %v422_v13, %v303_v18 }
 0x19c   :  { %v308_v20 = vmul.f32 %v307_v19, %v288_v3 }
 0x19e   :  { %309 = vst [vmem:[#allocation9] sm:$0xff] %v308_v20 }
 0x19f   :  { %320 = dma.vmem_to_hbm [thread:$0]  %s316_s3, 128, %s318_s13, [#allocation5]  }
 0x1a0   :  { %523 = dma.done.wait [#allocation5], 128  }
 0x1a1   :  { %524 = vsyncadd [#allocation5], 4294967168 }
 0x1a2   :  { %325 = vsyncpa [#allocation4], 1 }
 0x1a3   :  { %326 = vsyncpa [#allocation7], 1 }
 0x1a4   :  { %327 = vsyncpa [#allocation5], 1 }

</bundles_post_ra>
